<compile_context>
chip_gen: v6e
topology: v6e:2x2x1
jax: 0.10.0
libtpu: 0.0.40
codegen_flags: <defaults>
</compile_context>

<pallas_src>
import functools

import jax
import jax.numpy as jnp
import numpy as np
from jax.experimental import pallas as pl
from jax.experimental.pallas import tpu as pltpu


def _round_up(x, m):
    return ((x + m - 1) // m) * m


# --------------------------------------------------------------------------- #
# Pallas kernel: single grid step. Chebyshev recursion in f32, each T_{c,k}
# stored bf16 into a lane-offset slab, one deep MXU matmul for the projection.
# --------------------------------------------------------------------------- #
def _fused_multi_cheb_kernel(x_ref, L_ref, Wf_ref, b_ref, out_ref, t_slab,
                             *, K, num_convs, f_in_pad):
    x = x_ref[...]                                   # (N, F_in_pad) f32, loaded once

    for c in range(num_convs):                       # static unroll (C is small)
        L = L_ref[c]                                 # (N, N) f32 scaled Laplacian
        base = c * K * f_in_pad
        t_slab[:, pl.ds(base, f_in_pad)] = x.astype(jnp.bfloat16)          # T_0
        if K >= 2:
            t_prev = x
            t_cur = jnp.dot(L, x, preferred_element_type=jnp.float32)      # T_1
            t_slab[:, pl.ds(base + f_in_pad, f_in_pad)] = t_cur.astype(jnp.bfloat16)
            for k in range(2, K):
                t_new = 2.0 * jnp.dot(L, t_cur,
                                      preferred_element_type=jnp.float32) - t_prev
                t_slab[:, pl.ds(base + k * f_in_pad, f_in_pad)] = (
                    t_new.astype(jnp.bfloat16))
                t_prev, t_cur = t_cur, t_new

    # One deep MXU matmul: (N, C*K*F_in_pad) @ (C*K*F_in_pad, F_out_pad), f32 acc.
    out_ref[...] = (
        jnp.dot(t_slab[...], Wf_ref[...], preferred_element_type=jnp.float32)
        + b_ref[...]
    ).astype(out_ref.dtype)


def wrapped_multi_conv(x, L_stack, W_stack, b_stack, *, K):
    """x: (N, F_in); L_stack: (C, N, N); W_stack: (C, K, F_in, F_out);
    b_stack: (C, 1, F_out).  Returns (N, F_out) = sum_c ChebConv_c(x)."""
    num_convs, n, _ = L_stack.shape
    f_in = x.shape[1]
    f_out = W_stack.shape[-1]

    lane = 128
    f_in_pad = _round_up(f_in, lane)
    f_out_pad = _round_up(f_out, lane)
    ckf = num_convs * K * f_in_pad                   # fused contraction depth

    # Lane-dense padding of features (sliced back after the kernel).
    x_pad = jnp.zeros((n, f_in_pad), jnp.float32).at[:, :f_in].set(
        x.astype(jnp.float32))

    # Pad + fuse weights across convs AND orders:
    # (C, K, F_in, F_out) -> (C*K*F_in_pad, F_out_pad), bf16 MXU operand.
    W_pad = jnp.zeros((num_convs, K, f_in_pad, f_out_pad), jnp.float32)
    W_pad = W_pad.at[:, :, :f_in, :f_out].set(W_stack.astype(jnp.float32))
    W_fused = W_pad.reshape(ckf, f_out_pad).astype(jnp.bfloat16)

    # Bias hoisted: summed over convs, padded to lanes, added once.
    b_sum = jnp.zeros((1, f_out_pad), jnp.float32).at[:, :f_out].set(
        jnp.sum(b_stack.astype(jnp.float32), axis=0))

    # Laplacians stay f32 (accuracy through the recursion; DMA here is tiny).
    L_f32 = L_stack.astype(jnp.float32)

    kernel = functools.partial(
        _fused_multi_cheb_kernel, K=K, num_convs=num_convs, f_in_pad=f_in_pad)

    # VMEM budget (double-buffer worst case) + headroom; capped for v7x (64 MiB).
    vmem_bytes = (
        2 * n * f_in_pad * 4        # x
        + 2 * num_convs * n * n * 4 # f32 Laplacian stack
        + 2 * ckf * f_out_pad * 2   # fused bf16 weights
        + 2 * f_out_pad * 4         # bias
        + 2 * n * f_out_pad * 4     # output
        + n * ckf * 2               # bf16 T slab scratch
    )
    vmem_limit = int(min(48 * 2**20, max(4 * vmem_bytes, 16 * 2**20)))

    out_pad = pl.pallas_call(
        kernel,
        out_shape=jax.ShapeDtypeStruct((n, f_out_pad), jnp.float32),
        grid_spec=pltpu.PrefetchScalarGridSpec(
            num_scalar_prefetch=0,
            grid=(1,),
            in_specs=[
                pl.BlockSpec((n, f_in_pad), lambda i: (0, 0)),             # x
                pl.BlockSpec((num_convs, n, n), lambda i: (0, 0, 0)),      # L stack
                pl.BlockSpec((ckf, f_out_pad), lambda i: (0, 0)),          # fused W
                pl.BlockSpec((1, f_out_pad), lambda i: (0, 0)),            # summed bias
            ],
            out_specs=pl.BlockSpec((n, f_out_pad), lambda i: (0, 0)),
            scratch_shapes=[pltpu.VMEM((n, ckf), jnp.bfloat16)],           # T slab
        ),
        compiler_params=pltpu.CompilerParams(
            dimension_semantics=("arbitrary",),
            vmem_limit_bytes=vmem_limit,
        ),
    )(x_pad, L_f32, W_fused, b_sum)

    return out_pad[:, :f_out]


# --------------------------------------------------------------------------- #
# Glue: dense scaled Laplacian from sparse edge lists (matches PyG message passing:
# out[target] += weight * x[source] with edge_index = [source_row, target_col]).
# --------------------------------------------------------------------------- #
def build_scaled_laplacian(edge_index, edge_weight, num_nodes, lambda_max=2.0):
    # TODO(synk): PyG ChebConv with normalization=None takes lambda_max as an input;
    # we fix lambda_max=2.0 (PyG's implicit value for 'sym') here.
    row, col = edge_index[0], edge_index[1]
    w = edge_weight.astype(jnp.float32)
    deg = jnp.zeros((num_nodes,), jnp.float32).at[row].add(w)          # D (over sources)
    lap = jnp.zeros((num_nodes, num_nodes), jnp.float32)
    lap = lap.at[col, row].add(-w)                                     # -A (source -> target)
    idx = jnp.arange(num_nodes)
    lap = lap.at[idx, idx].add(deg)                                    # +D on the diagonal
    return (2.0 / lambda_max) * lap - jnp.eye(num_nodes, dtype=jnp.float32)


# --------------------------------------------------------------------------- #
# References:
#   * reference_f32     : original full-f32 module math.
#   * reference_matched : same numerics as the kernel (f32 recursion, bf16 operands
#                         only for the projection matmuls, f32 accumulation).
# --------------------------------------------------------------------------- #
def reference_f32(x, L_stack, W_stack, b_stack, K):
    out = jnp.zeros((x.shape[0], W_stack.shape[-1]), jnp.float32)
    for c in range(L_stack.shape[0]):
        L = L_stack[c]
        tx_prev = x
        acc = tx_prev @ W_stack[c, 0]
        if K >= 2:
            tx_cur = L @ x
            acc = acc + tx_cur @ W_stack[c, 1]
            for k in range(2, K):
                tx_new = 2.0 * (L @ tx_cur) - tx_prev
                acc = acc + tx_new @ W_stack[c, k]
                tx_prev, tx_cur = tx_cur, tx_new
        out = out + acc + b_stack[c, 0]
    return out


def reference_matched(x, L_stack, W_stack, b_stack, K):
    n = x.shape[0]
    f_out = W_stack.shape[-1]
    out = jnp.zeros((n, f_out), jnp.float32)
    for c in range(L_stack.shape[0]):
        L = L_stack[c].astype(jnp.float32)
        t_list = [x.astype(jnp.float32)]
        if K >= 2:
            t_prev = t_list[0]
            t_cur = jnp.dot(L, t_prev, preferred_element_type=jnp.float32)
            t_list.append(t_cur)
            for _ in range(2, K):
                t_new = 2.0 * jnp.dot(L, t_cur,
                                      preferred_element_type=jnp.float32) - t_prev
                t_list.append(t_new)
                t_prev, t_cur = t_cur, t_new
        for k in range(K):
            out = out + jnp.dot(t_list[k].astype(jnp.bfloat16),
                                W_stack[c, k].astype(jnp.bfloat16),
                                preferred_element_type=jnp.float32)
        out = out + b_stack[c, 0]
    return out


if __name__ == "__main__":
    # Module hyperparameters (small, consistent with the forward pass).
    num_convs = 2
    in_channels = 8
    out_channels = 8
    K = 3
    num_nodes = 16
    num_edges = 32

    key = jax.random.PRNGKey(0)
    k_x, k_w, k_b, *k_edges = jax.random.split(key, 3 + 2 * num_convs)

    # Node features.
    x = jax.random.normal(k_x, (num_nodes, in_channels), jnp.float32)

    # Deterministic parameter init (ChebConv: K weight matrices + bias per conv).
    W_stack = 0.1 * jax.random.normal(
        k_w, (num_convs, K, in_channels, out_channels), jnp.float32)
    b_stack = 0.1 * jax.random.normal(k_b, (num_convs, 1, out_channels), jnp.float32)

    # Per-conv sparse graphs (edge_index_list / edge_weights_list), then densified.
    L_list = []
    for c in range(num_convs):
        ke_i, ke_w = jax.random.split(k_edges[c])
        edge_index = jax.random.randint(ke_i, (2, num_edges), 0, num_nodes, jnp.int32)
        edge_weights = jax.random.uniform(ke_w, (num_edges,), jnp.float32) + 0.1
        L_list.append(build_scaled_laplacian(edge_index, edge_weights, num_nodes))
    L_stack = jnp.stack(L_list, axis=0)  # (num_convs, N, N)

    out = wrapped_multi_conv(x, L_stack, W_stack, b_stack, K=K)
    out = jax.block_until_ready(out)

    # Tight check against the numerics-matched reference (bf16 projection operands).
    ref_m = reference_matched(x, L_stack, W_stack, b_stack, K)
    np.testing.assert_allclose(np.asarray(out), np.asarray(ref_m), rtol=2e-2, atol=2e-2)

    # Check against the original full-f32 module math (bf16 projection rounding only).
    ref_f = reference_f32(x, L_stack, W_stack, b_stack, K)
    np.testing.assert_allclose(np.asarray(out), np.asarray(ref_f), rtol=2e-2, atol=2e-2)

    print("KERNEL_OK")
</pallas_src>

<mosaic_0001>
module attributes {stable_mosaic.version = 11 : i64} {
  func.func @_fused_multi_cheb_kernel(%arg0: i32, %arg1: memref<16x128xf32, #tpu.memory_space<vmem>>, %arg2: memref<2x16x16xf32, #tpu.memory_space<vmem>>, %arg3: memref<768x128xbf16, #tpu.memory_space<vmem>>, %arg4: memref<1x128xf32, #tpu.memory_space<vmem>>, %arg5: memref<16x128xf32, #tpu.memory_space<vmem>>, %arg6: memref<16x768xbf16, #tpu.memory_space<vmem>>) attributes {dimension_semantics = [#tpu.dimension_semantics<arbitrary>], iteration_bounds = array<i64: 1>, scalar_prefetch = 0 : i64, scratch_operands = 1 : i64, tpu.core_type = #tpu.core_type<tc>, window_params = [{pipeline_mode = #tpu.pipeline_mode<synchronous>, transform_indices = @transform_0, window_bounds = array<i64: 16, 128>}, {pipeline_mode = #tpu.pipeline_mode<synchronous>, transform_indices = @transform_1, window_bounds = array<i64: 2, 16, 16>}, {pipeline_mode = #tpu.pipeline_mode<synchronous>, transform_indices = @transform_2, window_bounds = array<i64: 768, 128>}, {pipeline_mode = #tpu.pipeline_mode<synchronous>, transform_indices = @transform_3, window_bounds = array<i64: 1, 128>}, {pipeline_mode = #tpu.pipeline_mode<synchronous>, transform_indices = @transform_4, window_bounds = array<i64: 16, 128>}]} {
    %c0 = arith.constant 0 : index
    %c0_0 = arith.constant 0 : index
    %0 = vector.load %arg1[%c0, %c0_0] : memref<16x128xf32, #tpu.memory_space<vmem>>, vector<16x128xf32>
    %c0_1 = arith.constant 0 : index
    %c0_2 = arith.constant 0 : index
    %c0_3 = arith.constant 0 : index
    %1 = vector.load %arg2[%c0_1, %c0_2, %c0_3] : memref<2x16x16xf32, #tpu.memory_space<vmem>>, vector<1x16x16xf32>
    %2 = vector.shape_cast %1 : vector<1x16x16xf32> to vector<16x16xf32>
    %3 = arith.truncf %0 : vector<16x128xf32> to vector<16x128xbf16>
    %c0_4 = arith.constant 0 : index
    %c0_5 = arith.constant 0 : index
    %4 = vector.load %arg6[%c0_4, %c0_5] : memref<16x768xbf16, #tpu.memory_space<vmem>>, vector<16x128xbf16>
    tpu.vector_store %arg6[%c0_4, %c0_5], %3 {strides = array<i32>} : memref<16x768xbf16, #tpu.memory_space<vmem>>, vector<16x128xbf16>,
    %cst = arith.constant dense<0.000000e+00> : vector<16x128xf32>
    %5 = tpu.matmul %2, %0, %cst {dimension_numbers = #tpu.dot_dimension_numbers<[1], [0], [0], [1], [0, 0, 1, 1], [], []>} : vector<16x16xf32>, vector<16x128xf32>, vector<16x128xf32> -> vector<16x128xf32>
    %6 = arith.truncf %5 : vector<16x128xf32> to vector<16x128xbf16>
    %c0_6 = arith.constant 0 : index
    %c128 = arith.constant 128 : index
    %7 = vector.load %arg6[%c0_6, %c128] : memref<16x768xbf16, #tpu.memory_space<vmem>>, vector<16x128xbf16>
    tpu.vector_store %arg6[%c0_6, %c128], %6 {strides = array<i32>} : memref<16x768xbf16, #tpu.memory_space<vmem>>, vector<16x128xbf16>,
    %cst_7 = arith.constant dense<0.000000e+00> : vector<16x128xf32>
    %8 = tpu.matmul %2, %5, %cst_7 {dimension_numbers = #tpu.dot_dimension_numbers<[1], [0], [0], [1], [0, 0, 1, 1], [], []>} : vector<16x16xf32>, vector<16x128xf32>, vector<16x128xf32> -> vector<16x128xf32>
    %cst_8 = arith.constant 2.000000e+00 : f32
    %9 = vector.broadcast %cst_8 : f32 to vector<16x128xf32>
    %10 = arith.mulf %9, %8 : vector<16x128xf32>
    %11 = arith.subf %10, %0 : vector<16x128xf32>
    %12 = arith.truncf %11 : vector<16x128xf32> to vector<16x128xbf16>
    %c0_9 = arith.constant 0 : index
    %c256 = arith.constant 256 : index
    %13 = vector.load %arg6[%c0_9, %c256] : memref<16x768xbf16, #tpu.memory_space<vmem>>, vector<16x128xbf16>
    tpu.vector_store %arg6[%c0_9, %c256], %12 {strides = array<i32>} : memref<16x768xbf16, #tpu.memory_space<vmem>>, vector<16x128xbf16>,
    %c1 = arith.constant 1 : index
    %c0_10 = arith.constant 0 : index
    %c0_11 = arith.constant 0 : index
    %14 = vector.load %arg2[%c1, %c0_10, %c0_11] : memref<2x16x16xf32, #tpu.memory_space<vmem>>, vector<1x16x16xf32>
    %15 = vector.shape_cast %14 : vector<1x16x16xf32> to vector<16x16xf32>
    %16 = arith.truncf %0 : vector<16x128xf32> to vector<16x128xbf16>
    %c0_12 = arith.constant 0 : index
    %c384 = arith.constant 384 : index
    %17 = vector.load %arg6[%c0_12, %c384] : memref<16x768xbf16, #tpu.memory_space<vmem>>, vector<16x128xbf16>
    tpu.vector_store %arg6[%c0_12, %c384], %16 {strides = array<i32>} : memref<16x768xbf16, #tpu.memory_space<vmem>>, vector<16x128xbf16>,
    %cst_13 = arith.constant dense<0.000000e+00> : vector<16x128xf32>
    %18 = tpu.matmul %15, %0, %cst_13 {dimension_numbers = #tpu.dot_dimension_numbers<[1], [0], [0], [1], [0, 0, 1, 1], [], []>} : vector<16x16xf32>, vector<16x128xf32>, vector<16x128xf32> -> vector<16x128xf32>
    %19 = arith.truncf %18 : vector<16x128xf32> to vector<16x128xbf16>
    %c0_14 = arith.constant 0 : index
    %c512 = arith.constant 512 : index
    %20 = vector.load %arg6[%c0_14, %c512] : memref<16x768xbf16, #tpu.memory_space<vmem>>, vector<16x128xbf16>
    tpu.vector_store %arg6[%c0_14, %c512], %19 {strides = array<i32>} : memref<16x768xbf16, #tpu.memory_space<vmem>>, vector<16x128xbf16>,
    %cst_15 = arith.constant dense<0.000000e+00> : vector<16x128xf32>
    %21 = tpu.matmul %15, %18, %cst_15 {dimension_numbers = #tpu.dot_dimension_numbers<[1], [0], [0], [1], [0, 0, 1, 1], [], []>} : vector<16x16xf32>, vector<16x128xf32>, vector<16x128xf32> -> vector<16x128xf32>
    %cst_16 = arith.constant 2.000000e+00 : f32
    %22 = vector.broadcast %cst_16 : f32 to vector<16x128xf32>
    %23 = arith.mulf %22, %21 : vector<16x128xf32>
    %24 = arith.subf %23, %0 : vector<16x128xf32>
    %25 = arith.truncf %24 : vector<16x128xf32> to vector<16x128xbf16>
    %c0_17 = arith.constant 0 : index
    %c640 = arith.constant 640 : index
    %26 = vector.load %arg6[%c0_17, %c640] : memref<16x768xbf16, #tpu.memory_space<vmem>>, vector<16x128xbf16>
    tpu.vector_store %arg6[%c0_17, %c640], %25 {strides = array<i32>} : memref<16x768xbf16, #tpu.memory_space<vmem>>, vector<16x128xbf16>,
    %c0_18 = arith.constant 0 : index
    %c0_19 = arith.constant 0 : index
    %27 = vector.load %arg6[%c0_18, %c0_19] : memref<16x768xbf16, #tpu.memory_space<vmem>>, vector<16x768xbf16>
    %c0_20 = arith.constant 0 : index
    %c0_21 = arith.constant 0 : index
    %28 = vector.load %arg3[%c0_20, %c0_21] : memref<768x128xbf16, #tpu.memory_space<vmem>>, vector<768x128xbf16>
    %cst_22 = arith.constant dense<0.000000e+00> : vector<16x128xf32>
    %29 = tpu.matmul %27, %28, %cst_22 {dimension_numbers = #tpu.dot_dimension_numbers<[1], [0], [0], [1], [0, 0, 1, 1], [], []>} : vector<16x768xbf16>, vector<768x128xbf16>, vector<16x128xf32> -> vector<16x128xf32>
    %c0_23 = arith.constant 0 : index
    %c0_24 = arith.constant 0 : index
    %30 = vector.load %arg4[%c0_23, %c0_24] : memref<1x128xf32, #tpu.memory_space<vmem>>, vector<1x128xf32>
    %31 = vector.broadcast %30 : vector<1x128xf32> to vector<16x128xf32>
    %32 = arith.addf %29, %31 : vector<16x128xf32>
    %c0_25 = arith.constant 0 : index
    %c0_26 = arith.constant 0 : index
    %33 = vector.load %arg5[%c0_25, %c0_26] : memref<16x128xf32, #tpu.memory_space<vmem>>, vector<16x128xf32>
    tpu.vector_store %arg5[%c0_25, %c0_26], %32 {strides = array<i32>} : memref<16x128xf32, #tpu.memory_space<vmem>>, vector<16x128xf32>,
    return
  }
  func.func @transform_0(%arg0: i32) -> (i32, i32) {
    %c0_i32 = arith.constant 0 : i32
    %c0_i32_0 = arith.constant 0 : i32
    %c0_i32_1 = arith.constant 0 : i32
    return %c0_i32, %c0_i32_0 : i32, i32
  }
  func.func @transform_1(%arg0: i32) -> (i32, i32, i32) {
    %c0_i32 = arith.constant 0 : i32
    %c0_i32_0 = arith.constant 0 : i32
    %c0_i32_1 = arith.constant 0 : i32
    %c0_i32_2 = arith.constant 0 : i32
    return %c0_i32, %c0_i32_0, %c0_i32_1 : i32, i32, i32
  }
  func.func @transform_2(%arg0: i32) -> (i32, i32) {
    %c0_i32 = arith.constant 0 : i32
    %c0_i32_0 = arith.constant 0 : i32
    %c0_i32_1 = arith.constant 0 : i32
    return %c0_i32, %c0_i32_0 : i32, i32
  }
  func.func @transform_3(%arg0: i32) -> (i32, i32) {
    %c0_i32 = arith.constant 0 : i32
    %c0_i32_0 = arith.constant 0 : i32
    %c0_i32_1 = arith.constant 0 : i32
    return %c0_i32, %c0_i32_0 : i32, i32
  }
  func.func @transform_4(%arg0: i32) -> (i32, i32) {
    %c0_i32 = arith.constant 0 : i32
    %c0_i32_0 = arith.constant 0 : i32
    %c0_i32_1 = arith.constant 0 : i32
    return %c0_i32, %c0_i32_0 : i32, i32
  }
}

</mosaic_0001>

<bundles_post_ra>
// kernel: tpu_custom_call.1
= control target key start
LH: loop header
LB: loop body
LE: loop exit
PB: predicated region body
PF: predicated region fallthrough
CT: control target
= control target key end

     0   :  { %9 = vsyncpa [#allocation4], 0  ;;  %s1452_s0 = inlined_call_operand.hbm [shape: f32[16,128], index: 0, kind: input, shape index: {}]   ;;  %s1453_s1 = inlined_call_operand.hbm [shape: f32[2,16,16], index: 1, kind: input, shape index: {}]   ;;  %s1454_s2 = inlined_call_operand.hbm [shape: bf16[768,128], index: 2, kind: input, shape index: {}]   ;;  %s1455_s3 = inlined_call_operand.vmem [shape: f32[1,128], index: 3, kind: input, shape index: {}]   ;;  %s1456_s4 = inlined_call_operand.hbm [shape: f32[16,128], index: 4, kind: output, shape index: {}]  }
   0x1   :  { %10 = vsyncpa [#allocation7], 0 }
   0x2   :  { %11 = vsyncpa [#allocation5], 0  ;;  %s1365_s15 = smov [#allocation6]   ;;  %s1366_s17 = smov [#allocation3]  }
   0x3   :  { %s29_s16 = sshll.u32 %s1365_s15, 4  ;;  %s17_s18 = sshll.u32 %s1366_s17, 4  ;;  %s30_s16 = int_to_ptr.vmem [resolvable:$true] %s29_s16  ;;  %s18_s18 = int_to_ptr.vmem [resolvable:$true] %s17_s18 }
   0x4   :  { %s1287_s19 = scalar_lea.vmem %s30_s16, 512  ;;  %p1292_p1 = scmp.lt.s32.totalorder %s30_s16, %s30_s16 }
   0x5   :  { %p1288_p0 = scmp.ne.s32.totalorder %s30_s16, %s1287_s19  ;;  %p1293_p2 = scmp.lt.s32.totalorder %s1287_s19, %s1287_s19 }
   0x7   :  { %p1294_p3 = por %p1293_p2, %p1292_p1 }
   0x9   :  { %p1295_p4 = pnand %p1294_p3, %p1288_p0 }
   0xb   :  { %1298 = shalt.err (!%p1295_p4)
}
   0xc   :  { %s1367_s20 = smov 128   ;;  %s1368_s21 = smov 8  }
   0xd   :  { %35 = dma.hbm_to_vmem [thread:$0]  %s1453_s1, 512, %s30_s16, [#allocation7], %s1367_s20, %s1367_s20, %s1368_s21  }
   0xe   :  { %s1307_s24 = scalar_lea.vmem %s18_s18, 256  ;;  %p1312_p6 = scmp.lt.s32.totalorder %s18_s18, %s18_s18 }
   0xf   :  { %p1308_p5 = scmp.ne.s32.totalorder %s18_s18, %s1307_s24  ;;  %p1313_p7 = scmp.lt.s32.totalorder %s1307_s24, %s1307_s24 }
  0x11   :  { %p1314_p8 = por %p1313_p7, %p1312_p6 }
  0x13   :  { %p1315_p9 = pnand %p1314_p8, %p1308_p5 }
  0x15   :  { %1318 = shalt.err (!%p1315_p9)
}
  0x16   :  { %23 = dma.hbm_to_vmem [thread:$0]  %s1452_s0, 256, %s18_s18, [#allocation4], %s1367_s20, %s1367_s20, %s1368_s21  }
  0x17   :  { %s1369_s27 = smov [#allocation8]  }
  0x18   :  { %s41_s28 = sshll.u32 %s1369_s27, 4  ;;  %s42_s28 = int_to_ptr.vmem [resolvable:$true] %s41_s28 }
  0x19   :  { %s1327_s29 = scalar_lea.vmem %s42_s28, 6144  ;;  %p1332_p11 = scmp.lt.s32.totalorder %s42_s28, %s42_s28 }
  0x1a   :  { %p1328_p10 = scmp.ne.s32.totalorder %s42_s28, %s1327_s29  ;;  %p1333_p12 = scmp.lt.s32.totalorder %s1327_s29, %s1327_s29 }
  0x1c   :  { %p1334_p13 = por %p1333_p12, %p1332_p11 }
  0x1e   :  { %p1335_p0 = pnand %p1334_p13, %p1328_p10 }
  0x20   :  { %1338 = shalt.err (!%p1335_p0)
}
  0x21   :  { %s1370_s1 = smov 64   ;;  %s1371_s30 = smov 4  }
  0x22   :  { %47 = dma.hbm_to_vmem [thread:$0]  %s1454_s2, 6144, %s42_s28, [#allocation7], %s1370_s1, %s1370_s1, %s1371_s30  }
  0x23   :  { %1359 = dma.done.wait [#allocation4], 256  }
  0x24   :  { %1360 = vsyncadd [#allocation4], 4294967040 }
  0x25   :  { %1361 = dma.done.wait [#allocation7], 6656  }
  0x26   :  { %1362 = vsyncadd [#allocation7], 4294960640  ;;  %vm74_vm0 = vcmask 130048   ;;  %v1413_v0 = vld [vmem:[#allocation3 + $0x8] sm:$0xff]  ;;  %v1415_v1 = vld [vmem:[#allocation3] sm:$0xff]  ;;  %s1372_s7 = smov [#allocation9]  }
  0x27   :  { %v62_v2 = vld [vmem:[#allocation6] sm:$0xff]  ;;  %v1084_v3 = vpack.c.bf16 %v1413_v0, %v1413_v0  ;;  %1187 = vmatprep.subr.mxu1 %v1413_v0  ;;  %v1083_v4 = vpack.c.bf16 %v1415_v1, %v1415_v1  ;;  %v63_v5 = vld [vmem:[#allocation6 + $0x8] sm:$0xff]  ;;  %v1223_v6 = vld [vmem:[#allocation8 + $0x78] sm:$0xff]   ;;  %v1277_v49 = vpack.c.bf16 %v1413_v0, %v1415_v1  ;;  %s997_s8 = sshll.u32 %s1372_s7, 4  ;;  %s998_s8 = int_to_ptr.vmem [resolvable:$true] %s997_s8 }
  0x28   :  { %1191 = vmatprep.mubr.msk.f32.mxu1 %vm74_vm0, %v62_v2  ;;  %1188 = vmatpush3.msra.mxu1 %v1413_v0  ;;  %v1224_v7 = vld [vmem:[#allocation8 + $0x38] sm:$0xff]   ;;  %v1225_v8 = vld [vmem:[#allocation8 + $0x70] sm:$0xff]   ;;  %v1227_v10 = vld [vmem:[#allocation8 + $0x68] sm:$0xff]   ;;  %p1344_p2 = scmp.lt.s32.totalorder %s998_s8, %s998_s8 }
  0x29   :  { %73 = vst [vmem:[#allocation2 + $0x18] sm:$0xf] %v1084_v3  ;;  %1189 = vmatprep.subr.mxu1 %v1415_v1  ;;  %72 = vst [vmem:[#allocation2] sm:$0xf] %v1083_v4  ;;  %1121 = vmatprep.subr.bf16.mxu0 %v1223_v6  ;;  %v1226_v9 = vld [vmem:[#allocation8 + $0x30] sm:$0xff]   ;;  %v1228_v11 = vld [vmem:[#allocation8 + $0x28] sm:$0xff]  }
  0x2a   :  { %1190 = vmatpush3.msra.mxu1 %v1415_v1  ;;  %1122 = vmatpush3.bf16.msra.mxu0 %v1224_v7  ;;  %v1229_v12 = vld [vmem:[#allocation8 + $0x60] sm:$0xff]   ;;  %v1231_v14 = vld [vmem:[#allocation8 + $0x58] sm:$0xff]   ;;  %v1233_v16 = vld [vmem:[#allocation8 + $0x50] sm:$0xff]  }
  0x2b   :  { %1192 = vmatmul.mubr.msk.f32.vlgmr.msra.gmra.mxu1 %vm74_vm0, %v63_v5  ;;  %1123 = vmatprep.subr.bf16.mxu0 %v1225_v8  ;;  %v1230_v13 = vld [vmem:[#allocation8 + $0x20] sm:$0xff]   ;;  %v1232_v15 = vld [vmem:[#allocation8 + $0x18] sm:$0xff]   ;;  %v1234_v17 = vld [vmem:[#allocation8 + $0x10] sm:$0xff]  }
  0x2c   :  { %1198 = vmatprep.mubr.msk.f32.mxu1 %vm74_vm0, %v62_v2  ;;  %v1235_v18 = vld [vmem:[#allocation8 + $0x48] sm:$0xff]   ;;  %v1237_v20 = vld [vmem:[#allocation8 + $0x40] sm:$0xff]   ;;  %v256_v26 = vld [vmem:[#allocation6 + $0x10] sm:$0xff] }
  0x2d   :  { %v1236_v19 = vld [vmem:[#allocation8 + $0x8] sm:$0xff]   ;;  %v1238_v21 = vld [vmem:[#allocation8] sm:$0xff]   ;;  %v257_v27 = vld [vmem:[#allocation6 + $0x18] sm:$0xff] }
  0x2e   :  { %1124 = vmatpush3.bf16.msra.mxu0 %v1226_v9  ;;  %v1258_v30 = vld [vmem:[#allocation8 + $0x178] sm:$0xff]   ;;  %v1260_v32 = vld [vmem:[#allocation8 + $0x170] sm:$0xff]   ;;  %v1262_v34 = vld [vmem:[#allocation8 + $0x168] sm:$0xff]  }
  0x2f   :  { %1125 = vmatprep.subr.bf16.mxu0 %v1227_v10  ;;  %v1259_v31 = vld [vmem:[#allocation8 + $0x138] sm:$0xff]   ;;  %v1261_v33 = vld [vmem:[#allocation8 + $0x130] sm:$0xff]   ;;  %v1263_v35 = vld [vmem:[#allocation8 + $0x128] sm:$0xff]  }
  0x30   :  { %v1239_v28 = vld [vmem:[#allocation2] ss:$24 sps:$4 sm:$0xff]   ;;  %v1244_v48 = vld [vmem:[#allocation8 + $0xf0] sm:$0xff]   ;;  %v1246_v51 = vld [vmem:[#allocation8 + $0xe8] sm:$0xff]  }
  0x31   :  { %v1242_v44 = vld [vmem:[#allocation8 + $0xf8] sm:$0xff]   ;;  %v1245_v50 = vld [vmem:[#allocation8 + $0xb0] sm:$0xff]   ;;  %v1247_v52 = vld [vmem:[#allocation8 + $0xa8] sm:$0xff]  }
  0x32   :  { %1126 = vmatpush3.bf16.msra.mxu0 %v1228_v11  ;;  %v1243_v46 = vld [vmem:[#allocation8 + $0xb8] sm:$0xff]   ;;  %v1248_v53 = vld [vmem:[#allocation8 + $0xe0] sm:$0xff]   ;;  %v1252_v57 = vld [vmem:[#allocation8 + $0xd0] sm:$0xff]  }
  0x33   :  { %1127 = vmatprep.subr.bf16.mxu0 %v1229_v12  ;;  %v1249_v54 = vld [vmem:[#allocation8 + $0xa0] sm:$0xff]   ;;  %v1250_v55 = vld [vmem:[#allocation8 + $0xd8] sm:$0xff]   ;;  %v1253_v58 = vld [vmem:[#allocation8 + $0x90] sm:$0xff]  }
  0x34   :  { %v1251_v56 = vld [vmem:[#allocation8 + $0x98] sm:$0xff]   ;;  %v1254_v59 = vld [vmem:[#allocation8 + $0xc8] sm:$0xff]   ;;  %v1256_v61 = vld [vmem:[#allocation8 + $0xc0] sm:$0xff]  }
  0x35   :  { %v1255_v60 = vld [vmem:[#allocation8 + $0x88] sm:$0xff]   ;;  %v1257_v62 = vld [vmem:[#allocation8 + $0x80] sm:$0xff]   ;;  %v1266_v4 = vld [vmem:[#allocation8 + $0x158] sm:$0xff]  }
  0x36   :  { %1128 = vmatpush3.bf16.msra.mxu0 %v1230_v13  ;;  %v1264_v2 = vld [vmem:[#allocation8 + $0x160] sm:$0xff]   ;;  %v1268_v6 = vld [vmem:[#allocation8 + $0x150] sm:$0xff]   ;;  %v1270_v8 = vld [vmem:[#allocation8 + $0x148] sm:$0xff]  }
  0x37   :  { %1129 = vmatprep.subr.bf16.mxu0 %v1231_v14  ;;  %v1265_v3 = vld [vmem:[#allocation8 + $0x120] sm:$0xff]   ;;  %v1269_v7 = vld [vmem:[#allocation8 + $0x110] sm:$0xff]   ;;  %v1271_v9 = vld [vmem:[#allocation8 + $0x108] sm:$0xff]  }
  0x38   :  { %v1272_v10 = vld [vmem:[#allocation8 + $0x140] sm:$0xff]  }
  0x39   :  { %v1273_v11 = vld [vmem:[#allocation8 + $0x100] sm:$0xff]  }
  0x3a   :  { %1130 = vmatpush3.bf16.msra.mxu0 %v1232_v15 }
  0x3b   :  { %1131 = vmatprep.subr.bf16.mxu0 %v1233_v16 }
  0x3e   :  { %1132 = vmatpush3.bf16.msra.mxu0 %v1234_v17 }
  0x3f   :  { %1133 = vmatprep.subr.bf16.mxu0 %v1235_v18 }
  0x42   :  { %1134 = vmatpush3.bf16.msra.mxu0 %v1236_v19 }
  0x43   :  { %1135 = vmatprep.subr.bf16.mxu0 %v1237_v20 }
  0x46   :  { %1136 = vmatpush3.bf16.msra.mxu0 %v1238_v21 }
  0x47   :  { %1165 = vmatprep.subr.bf16.mxu0 %v1258_v30 }
  0xeb   :  { %v1193_v22 = vpop.f32.mrf.mxu1 }
  0xec   :  { %v1086_v23 = vpack.c.bf16 %v1193_v22, %v1193_v22  ;;  %1194 = vmatprep.subr.mxu1 %v1193_v22 }
  0xed   :  { %v147_v24 = vpop.f32.mrf.mxu1  ;;  %1195 = vmatpush3.msra.mxu1 %v1193_v22 }
  0xee   :  { %165 = vst [vmem:[#allocation2 + $0x1c] sm:$0xf] %v1086_v23  ;;  %v1085_v25 = vpack.c.bf16 %v147_v24, %v147_v24  ;;  %1196 = vmatprep.subr.mxu1 %v147_v24 }
  0xef   :  { %1197 = vmatpush3.msra.mxu1 %v147_v24 }
  0xf0   :  { %164 = vst [vmem:[#allocation2 + $0x4] sm:$0xf] %v1085_v25  ;;  %1199 = vmatmul.mubr.msk.f32.vlgmr.msra.gmra.mxu1 %vm74_vm0, %v63_v5  ;;  %1201 = vmatprep.subr.mxu1 %v1413_v0  ;;  %v1267_v5 = vld [vmem:[#allocation8 + $0x118] sm:$0xff]  }
  0xf1   :  { %1202 = vmatpush3.msra.mxu1 %v1413_v0  ;;  %1205 = vmatprep.mubr.msk.f32.mxu1 %vm74_vm0, %v256_v26 }
  0xf2   :  { %1203 = vmatprep.subr.mxu1 %v1415_v1 }
  0xf3   :  { %1204 = vmatpush3.msra.mxu1 %v1415_v1 }
  0xf4   :  { %1206 = vmatmul.mubr.msk.f32.vlgmr.msra.gmra.mxu1 %vm74_vm0, %v257_v27 }
  0xf5   :  { %1212 = vmatprep.mubr.msk.f32.mxu1 %vm74_vm0, %v256_v26 }
  0xf7   :  { %v1241_v29 = vld [vmem:[#allocation2 + $0x4] ss:$24 sps:$4 sm:$0xff]  }
  0xf8   :  { %899 = vmatprep.mubr.bf16.mxu0 %v1241_v29 }
  0xf9   :  { %900 = vmatmul.mubr.bf16.vlgmr.msra.gmra.mxu0 %v1239_v28 }
  0xfa   :  { %1166 = vmatpush3.bf16.msra.mxu0 %v1259_v31 }
  0xfb   :  { %1167 = vmatprep.subr.bf16.mxu0 %v1260_v32 }
  0xfe   :  { %1168 = vmatpush3.bf16.msra.mxu0 %v1261_v33 }
  0xff   :  { %1169 = vmatprep.subr.bf16.mxu0 %v1262_v34 }
 0x102   :  { %1170 = vmatpush3.bf16.msra.mxu0 %v1263_v35 }
 0x103   :  { %1171 = vmatprep.subr.bf16.mxu0 %v1264_v2 }
 0x106   :  { %1172 = vmatpush3.bf16.msra.mxu0 %v1265_v3 }
 0x107   :  { %1173 = vmatprep.subr.bf16.mxu0 %v1266_v4 }
 0x10a   :  { %1174 = vmatpush3.bf16.msra.mxu0 %v1267_v5 }
 0x10b   :  { %1175 = vmatprep.subr.bf16.mxu0 %v1268_v6 }
 0x10e   :  { %1176 = vmatpush3.bf16.msra.mxu0 %v1269_v7 }
 0x10f   :  { %1177 = vmatprep.subr.bf16.mxu0 %v1270_v8 }
 0x112   :  { %1178 = vmatpush3.bf16.msra.mxu0 %v1271_v9 }
 0x113   :  { %1179 = vmatprep.subr.bf16.mxu0 %v1272_v10 }
 0x116   :  { %1180 = vmatpush3.bf16.msra.mxu0 %v1273_v11 }
 0x1b0   :  { %v1200_v36 = vpop.f32.mrf.mxu1 }
 0x1b1   :  { %v242_v37 = vmul.f32 2.0, %v1200_v36 }
 0x1b2   :  { %v232_v38 = vpop.f32.mrf.mxu1 }
 0x1b3   :  { %v244_v39 = vsub.f32 %v242_v37, %v1413_v0  ;;  %v241_v40 = vmul.f32 2.0, %v232_v38 }
 0x1b4   :  { %v1207_v41 = vpop.f32.mrf.mxu1 }
 0x1b5   :  { %v243_v42 = vsub.f32 %v241_v40, %v1415_v1  ;;  %v1090_v43 = vpack.c.bf16 %v1207_v41, %v1207_v41  ;;  %1208 = vmatprep.subr.mxu1 %v1207_v41 }
 0x1b6   :  { %v332_v45 = vpop.f32.mrf.mxu1  ;;  %1209 = vmatpush3.msra.mxu1 %v1207_v41 }
 0x1b7   :  { %350 = vst [vmem:[#allocation2 + $0x28] sm:$0xf] %v1090_v43  ;;  %v1089_v47 = vpack.c.bf16 %v332_v45, %v332_v45  ;;  %1210 = vmatprep.subr.mxu1 %v332_v45  ;;  %v1278_v63 = vpack.c.bf16 %v244_v39, %v243_v42 }
 0x1b8   :  { %1211 = vmatpush3.msra.mxu1 %v332_v45 }
 0x1b9   :  { %349 = vst [vmem:[#allocation2 + $0x10] sm:$0xf] %v1089_v47  ;;  %1213 = vmatmul.mubr.msk.f32.vlgmr.msra.gmra.mxu1 %vm74_vm0, %v257_v27  ;;  %1143 = vmatprep.subr.bf16.mxu1 %v1242_v44  ;;  %v1137_v22 = vpop.f32.mrf.mxu0 }
 0x1ba   :  { %1144 = vmatpush3.bf16.msra.mxu1 %v1243_v46  ;;  %940 = vmatprep.mubr.bf16.mxu1 %v1277_v49 }
 0x1bb   :  { %1145 = vmatprep.subr.bf16.mxu1 %v1244_v48  ;;  %v1138_v24 = vpop.f32.mrf.mxu0 }
 0x1bc   :  { %v1139_v28 = vadd.f32 %v1138_v24, %v1137_v22 }
 0x1bd   :  { %v1140_v26 = vpop.f32.mrf.mxu0 }
 0x1be   :  { %1146 = vmatpush3.bf16.msra.mxu1 %v1245_v50 }
 0x1bf   :  { %1147 = vmatprep.subr.bf16.mxu1 %v1246_v51  ;;  %v1141_v29 = vpop.f32.mrf.mxu0 }
 0x1c0   :  { %v1274_v20 = vld [vmem:[#allocation2 + $0x10] ss:$24 sps:$4 sm:$0xff]   ;;  %v1142_v33 = vadd.f32 %v1141_v29, %v1140_v26 }
 0x1c2   :  { %1148 = vmatpush3.bf16.msra.mxu1 %v1247_v52 }
 0x1c3   :  { %1149 = vmatprep.subr.bf16.mxu1 %v1248_v53 }
 0x1c6   :  { %1150 = vmatpush3.bf16.msra.mxu1 %v1249_v54 }
 0x1c7   :  { %1151 = vmatprep.subr.bf16.mxu1 %v1250_v55 }
 0x1ca   :  { %1152 = vmatpush3.bf16.msra.mxu1 %v1251_v56 }
 0x1cb   :  { %1153 = vmatprep.subr.bf16.mxu1 %v1252_v57 }
 0x1ce   :  { %1154 = vmatpush3.bf16.msra.mxu1 %v1253_v58 }
 0x1cf   :  { %1155 = vmatprep.subr.bf16.mxu1 %v1254_v59 }
 0x1d2   :  { %1156 = vmatpush3.bf16.msra.mxu1 %v1255_v60 }
 0x1d3   :  { %1157 = vmatprep.subr.bf16.mxu1 %v1256_v61 }
 0x1d6   :  { %1158 = vmatpush3.bf16.msra.mxu1 %v1257_v62 }
 0x1d9   :  { %941 = vmatmul.mubr.bf16.vlgmr.msra.gmra.mxu1 %v1278_v63 }
 0x279   :  { %v1214_v12 = vpop.f32.mrf.mxu1 }
 0x27a   :  { %v427_v13 = vmul.f32 2.0, %v1214_v12 }
 0x27b   :  { %v417_v14 = vpop.f32.mrf.mxu1 }
 0x27c   :  { %v429_v15 = vsub.f32 %v427_v13, %v1413_v0  ;;  %v426_v16 = vmul.f32 2.0, %v417_v14  ;;  %v1028_v0 = vld [vmem:[%s1455_s3] ss:$0 sm:$0xff]  ;;  %s1339_s3 = scalar_lea.vmem %s998_s8, 256 }
 0x27d   :  { %v902_v32 = vadd.f32 %v1139_v28, %v1028_v0  ;;  %v905_v39 = vadd.f32 %v1142_v33, %v1028_v0  ;;  %p1340_p1 = scmp.ne.s32.totalorder %s998_s8, %s1339_s3  ;;  %p1345_p3 = scmp.lt.s32.totalorder %s1339_s3, %s1339_s3 }
 0x27e   :  { %v1092_v17 = vpack.c.bf16 %v429_v15, %v429_v15  ;;  %v428_v18 = vsub.f32 %v426_v16, %v1415_v1 }
 0x27f   :  { %p1346_p4 = por %p1345_p3, %p1344_p2 }
 0x280   :  { %439 = vst [vmem:[#allocation2 + $0x2c] sm:$0xf] %v1092_v17  ;;  %v1091_v19 = vpack.c.bf16 %v428_v18, %v428_v18 }
 0x281   :  { %p1347_p5 = pnand %p1346_p4, %p1340_p1 }
 0x282   :  { %438 = vst [vmem:[#allocation2 + $0x14] sm:$0xf] %v1091_v19 }
 0x289   :  { %v1276_v21 = vld [vmem:[#allocation2 + $0x14] ss:$24 sps:$4 sm:$0xff]  }
 0x28a   :  { %981 = vmatprep.mubr.bf16.mxu0 %v1276_v21 }
 0x28b   :  { %982 = vmatmul.mubr.bf16.vlgmr.msra.gmra.mxu0 %v1274_v20 }
 0x299   :  { %v1159_v23 = vpop.f32.mrf.mxu1 }
 0x29b   :  { %v1160_v25 = vpop.f32.mrf.mxu1 }
 0x29c   :  { %v1161_v1 = vadd.f32 %v1160_v25, %v1159_v23 }
 0x29d   :  { %v1162_v27 = vpop.f32.mrf.mxu1 }
 0x29e   :  { %v943_v35 = vadd.f32 %v1161_v1, %v902_v32 }
 0x29f   :  { %v1163_v30 = vpop.f32.mrf.mxu1 }
 0x2a0   :  { %v1164_v36 = vadd.f32 %v1163_v30, %v1162_v27 }
 0x2a2   :  { %v946_v42 = vadd.f32 %v1164_v36, %v905_v39 }
 0x34b   :  { %v1181_v31 = vpop.f32.mrf.mxu0 }
 0x34d   :  { %v1182_v34 = vpop.f32.mrf.mxu0 }
 0x34e   :  { %v1183_v37 = vadd.f32 %v1182_v34, %v1181_v31 }
 0x34f   :  { %v1184_v38 = vpop.f32.mrf.mxu0 }
 0x350   :  { %v984_v40 = vadd.f32 %v1183_v37, %v943_v35 }
 0x351   :  { %v1185_v41 = vpop.f32.mrf.mxu0 }
 0x352   :  { %990 = vst [vmem:[#allocation9] sm:$0xff] %v984_v40  ;;  %v1186_v43 = vadd.f32 %v1185_v41, %v1184_v38 }
 0x354   :  { %v987_v44 = vadd.f32 %v1186_v43, %v946_v42 }
 0x356   :  { %991 = vst [vmem:[#allocation9 + $0x8] sm:$0xff] %v987_v44 }
 0x357   :  { %1350 = shalt.err (!%p1347_p5)
}
 0x358   :  { %1003 = dma.vmem_to_hbm [thread:$0]  %s998_s8, 256, %s1456_s4, [#allocation5], %s1367_s20, %s1367_s20, %s1368_s21  }
 0x359   :  { %1363 = dma.done.wait [#allocation5], 256  }
 0x35a   :  { %1364 = vsyncadd [#allocation5], 4294967040 }
 0x35b   :  { %1007 = vsyncpa [#allocation4], 1 }
 0x35c   :  { %1008 = vsyncpa [#allocation7], 1 }
 0x35d   :  { %1009 = vsyncpa [#allocation5], 1 }

</bundles_post_ra>
